<compile_context>
chip_gen: v6e
topology: v6e:2x2x1
jax: 0.10.0
libtpu: 0.0.40
codegen_flags: <defaults>
</compile_context>

<pallas_src>
import functools
import math

import numpy as np
import jax
import jax.numpy as jnp
from jax import lax
from jax.experimental import pallas as pl
from jax.experimental.pallas import tpu as pltpu

LOG_LIK_C = float(np.log(np.sqrt(2.0 * np.pi)))


def _round_up(x, m):
    return ((x + m - 1) // m) * m


def _cdiv(a, b):
    return -(-a // b)


def _pick_tile(n_obs, row_tile):
    """Remainder-aware tile selection.

    Returns (tile, num_tiles) with tile % 8 == 0, tile * num_tiles >= n_obs,
    padding bounded by ~8 rows per tile, and >= 2 grid steps whenever n_obs is
    large enough (so v7x's two TensorCores both get work)."""
    assert n_obs > 0
    half = _round_up(_cdiv(n_obs, 2), 8)
    target = max(8, min(_round_up(row_tile, 8), half))
    num_tiles = _cdiv(n_obs, target)
    tile = _round_up(_cdiv(n_obs, num_tiles), 8)
    return tile, num_tiles


def _gru_obs_kernel(i_obs_ref,                       # SMEM (n_obs,) int32 [scalar prefetch]
                    x_ref, m_ref,                    # VMEM (tile, D) each
                    p_hbm, h_hbm,                    # ANY  (N, 2D) / (N, H)
                    w_prep_ref, w_top_ref, w_bot_ref, b_gru_ref,
                    h_out_hbm,                       # ANY  (N, H)  (aliased with h_hbm)
                    loss_ref,                        # VMEM (tile, D) output
                    p_buf, h_buf, hnew_buf, sems,    # scratch
                    *, D, P, H, tile, n_obs):
    base = pl.program_id(0) * tile
    rows = jnp.minimum(tile, n_obs - base)           # valid rows in this tile

    # ---- in-kernel row gather: p[i_obs], h[i_obs]  (start all, then wait all).
    # TODO(synk): prefetch the next tile's rows during this tile's compute
    # (manual double buffer) to hide the gather latency across grid steps.
    def _gather_start(row, c):
        idx = i_obs_ref[base + row]
        pltpu.make_async_copy(p_hbm.at[pl.ds(idx, 1), :],
                              p_buf.at[pl.ds(row, 1), :], sems.at[0]).start()
        pltpu.make_async_copy(h_hbm.at[pl.ds(idx, 1), :],
                              h_buf.at[pl.ds(row, 1), :], sems.at[1]).start()
        return c
    lax.fori_loop(0, rows, _gather_start, 0)

    def _gather_wait(row, c):
        pltpu.make_async_copy(p_hbm.at[pl.ds(0, 1), :],
                              p_buf.at[pl.ds(0, 1), :], sems.at[0]).wait()
        pltpu.make_async_copy(h_hbm.at[pl.ds(0, 1), :],
                              h_buf.at[pl.ds(0, 1), :], sems.at[1]).wait()
        return c
    lax.fori_loop(0, rows, _gather_wait, 0)

    x = x_ref[...]                                   # (tile, D)
    m = m_ref[...]                                   # (tile, D)   mask, m >= 0
    p_obs = p_buf[...]                               # (tile, 2D)  gathered
    h_obs = h_buf[...]                               # (tile, H)   gathered
    # Rows >= `rows` hold stale VMEM garbage; they never feed valid outputs
    # (losses for those rows are sliced off, h_new for them is never DMA'd).

    mean = p_obs[:, :D]
    logvar_c = jnp.clip(p_obs[:, D:], -10.0, 10.0)
    # sigma = exp(0.5*logvar_c) lies in [e^-5, e^5]; the [1e-6, 1e6] clamp of the
    # reference is a no-op, so use an EUP exp + multiply instead of a divide.
    inv_sigma = jnp.exp(-0.5 * logvar_c)
    error_c = jnp.clip((x - mean) * inv_sigma, -1e6, 1e6)

    loss_ref[...] = 0.5 * ((error_c * error_c + logvar_c + 2.0 * LOG_LIK_C) * m)

    # Fused prep: one (tile, 5D) @ (5D, D*P) matmul; mask folded into the operand
    # (exact for m >= 0); output feature index is d*P + p (torch .view ordering).
    prep_in = jnp.concatenate(
        [x * m, mean * m, logvar_c * m, error_c * m, m], axis=-1)
    gru_in = jnp.maximum(
        jnp.dot(prep_in, w_prep_ref[...], preferred_element_type=jnp.float32),
        0.0)

    # PyTorch GRUCell (gate order r, z, n): two dots summed (no lane concat);
    # r/z columns are pre-summed across ih/hh, ih-n and hh-n kept separate.
    g = (jnp.dot(gru_in, w_top_ref[...], preferred_element_type=jnp.float32)
         + jnp.dot(h_obs, w_bot_ref[...], preferred_element_type=jnp.float32)
         + b_gru_ref[...])
    rz = jax.nn.sigmoid(g[:, :2 * H])
    r = rz[:, :H]
    z = rz[:, H:]
    n_gate = jnp.tanh(g[:, 2 * H:3 * H] + r * g[:, 3 * H:])
    hnew_buf[...] = (1.0 - z) * n_gate + z * h_obs

    # ---- in-kernel scatter: h[i_obs] = h_new for the valid rows only.
    def _scatter_start(row, c):
        idx = i_obs_ref[base + row]
        pltpu.make_async_copy(hnew_buf.at[pl.ds(row, 1), :],
                              h_out_hbm.at[pl.ds(idx, 1), :], sems.at[2]).start()
        return c
    lax.fori_loop(0, rows, _scatter_start, 0)

    def _scatter_wait(row, c):
        pltpu.make_async_copy(hnew_buf.at[pl.ds(0, 1), :],
                              h_out_hbm.at[pl.ds(0, 1), :], sems.at[2]).wait()
        return c
    lax.fori_loop(0, rows, _scatter_wait, 0)


class GRUObservationCellLogvarPallas:
    def __init__(self, input_size, hidden_size, prep_hidden, key, row_tile=1024):
        D, H, P = input_size, hidden_size, prep_hidden
        self.D, self.H, self.P = D, H, P
        self.row_tile = row_tile
        k1, k2, k3, k4, k5 = jax.random.split(key, 5)

        std = math.sqrt(2.0 / (4 + prep_hidden))
        self.w_prep = std * jax.random.normal(k1, (D, 4, P), jnp.float32)
        self.bias_prep = 0.1 + jnp.zeros((D, P), jnp.float32)

        bound = 1.0 / math.sqrt(H)
        self.weight_ih = jax.random.uniform(k2, (3 * H, P * D), jnp.float32, -bound, bound)
        self.weight_hh = jax.random.uniform(k3, (3 * H, H), jnp.float32, -bound, bound)
        self.bias_ih = jax.random.uniform(k4, (3 * H,), jnp.float32, -bound, bound)
        self.bias_hh = jax.random.uniform(k5, (3 * H,), jnp.float32, -bound, bound)

        # ---- derived, kernel-ready fused parameters (built once, pure glue) ----
        eye = jnp.eye(D, dtype=jnp.float32)

        def block_diag(w_dp):   # (D, P) -> (D, D*P): out[d, d*P + p] = w_dp[d, p]
            return (eye[:, :, None] * w_dp[:, None, :]).reshape(D, D * P)

        # Rows [kD:(k+1)D) handle input k in {x, mean, logvar, error}; the 5th
        # block carries bias_prep (scaled by the mask block).
        # TODO(synk): for large D (>=128-256, esp. v7x 64MiB VMEM) replace this
        # O(D^2*P) zero-padded block-diag matmul by a per-feature VPU
        # formulation (5 multiply-adds per output) so VMEM stops scaling as D^2.
        self.w_prep_fused = jnp.concatenate(
            [block_diag(self.w_prep[:, k, :]) for k in range(4)]
            + [block_diag(self.bias_prep)], axis=0)              # (5D, D*P)

        # Two-dot fused GRU weights: cols [0:2H) = r/z blocks, [2H:3H) ih n-block,
        # [3H:4H) hh n-block (4H = 128 for H = 32 -> lane-dense gate tensor).
        w_ih_t = self.weight_ih.T                                 # (D*P, 3H)
        w_hh_t = self.weight_hh.T                                 # (H,   3H)
        self.w_gru_top = jnp.concatenate(
            [w_ih_t[:, :2 * H], w_ih_t[:, 2 * H:],
             jnp.zeros((D * P, H), jnp.float32)], axis=1)         # (D*P, 4H)
        self.w_gru_bot = jnp.concatenate(
            [w_hh_t[:, :2 * H], jnp.zeros((H, H), jnp.float32),
             w_hh_t[:, 2 * H:]], axis=1)                          # (H, 4H)
        self.b_gru_fused = jnp.concatenate(
            [self.bias_ih[:2 * H] + self.bias_hh[:2 * H],
             self.bias_ih[2 * H:], self.bias_hh[2 * H:]]).reshape(1, 4 * H)

    def __call__(self, h, p, X_obs, M_obs, i_obs):
        D, H, P = self.D, self.H, self.P
        N = h.shape[0]
        n_obs = X_obs.shape[0]
        if n_obs == 0:                               # guard empty-observation case
            return h, jnp.zeros((0, D), h.dtype)

        tile, num_tiles = _pick_tile(n_obs, self.row_tile)
        n_pad = tile * num_tiles
        pad = n_pad - n_obs
        X_pad = jnp.pad(X_obs, ((0, pad), (0, 0))) if pad else X_obs
        M_pad = jnp.pad(M_obs, ((0, pad), (0, 0))) if pad else M_obs
        i_obs = i_obs.astype(jnp.int32)

        kernel = functools.partial(_gru_obs_kernel, D=D, P=P, H=H,
                                   tile=tile, n_obs=n_obs)
        row = lambda w: pl.BlockSpec((tile, w), lambda i, s: (i, 0))
        whole = lambda shp: pl.BlockSpec(shp, lambda i, s: (0, 0))   # resident weights
        anyspec = pl.BlockSpec(memory_space=pl.ANY)                  # raw HBM refs

        flops = 2 * n_pad * (5 * D * D * P + D * P * 4 * H + H * 4 * H)
        transcendentals = n_pad * (D + 3 * H)
        bytes_accessed = 4 * (n_pad * (2 * D + D) + n_obs * (2 * D + 2 * H)
                              + 5 * D * D * P + (D * P + H) * 4 * H + 4 * H)

        # TODO(synk): bf16 activations/weights (f32 math for logvar/exp/loss)
        # would halve DMA bytes on v5e/v6e; kept f32 for exactness here.
        h_out, losses = pl.pallas_call(
            kernel,
            out_shape=(jax.ShapeDtypeStruct((N, H), jnp.float32),
                       jax.ShapeDtypeStruct((n_pad, D), jnp.float32)),
            grid_spec=pltpu.PrefetchScalarGridSpec(
                num_scalar_prefetch=1,
                grid=(num_tiles,),
                in_specs=[row(D), row(D),            # X_obs, M_obs
                          anyspec, anyspec,          # p, h (HBM, manual DMA)
                          whole((5 * D, D * P)),
                          whole((D * P, 4 * H)),
                          whole((H, 4 * H)),
                          whole((1, 4 * H))],
                out_specs=(pl.BlockSpec(memory_space=pl.ANY),        # h (in-place)
                           pl.BlockSpec((tile, D), lambda i, s: (i, 0))),
                scratch_shapes=[pltpu.VMEM((tile, 2 * D), jnp.float32),   # p rows
                                pltpu.VMEM((tile, H), jnp.float32),       # h rows
                                pltpu.VMEM((tile, H), jnp.float32),       # h_new
                                pltpu.SemaphoreType.DMA((3,))]),
            # arg order: i_obs(0), X(1), M(2), p(3), h(4), weights... -> alias h.
            input_output_aliases={4: 0},
            compiler_params=pltpu.CompilerParams(
                dimension_semantics=("parallel",),        # shard tiles across v7x TCs
                vmem_limit_bytes=32 * 1024 * 1024),
            cost_estimate=pl.CostEstimate(flops=flops,
                                          transcendentals=transcendentals,
                                          bytes_accessed=bytes_accessed),
        )(i_obs, X_pad, M_pad, p, h,
          self.w_prep_fused, self.w_gru_top, self.w_gru_bot, self.b_gru_fused)

        return h_out, losses[:n_obs]


def reference_forward(mod, h, p, X_obs, M_obs, i_obs):
    """Pure-JAX transcription of the PyTorch forward, for verification."""
    D, P, H = mod.D, mod.P, mod.H
    p_obs = p[i_obs]
    mean, logvar = p_obs[:, :D], p_obs[:, D:]
    logvar_c = jnp.clip(logvar, -10.0, 10.0)
    sigma_c = jnp.clip(jnp.exp(0.5 * logvar_c), 1e-6, 1e6)
    error_c = jnp.clip((X_obs - mean) / sigma_c, -1e6, 1e6)
    losses = 0.5 * ((error_c ** 2 + logvar_c + 2.0 * LOG_LIK_C) * M_obs)
    stacked = jnp.stack([X_obs, mean, logvar_c, error_c], axis=2)       # (n, D, 4)
    prep = jnp.einsum('ndk,dkp->ndp', stacked, mod.w_prep) + mod.bias_prep
    prep = jax.nn.relu(prep)
    gru_in = (prep * M_obs[:, :, None]).reshape(-1, P * D)
    h_obs = h[i_obs]
    gi = gru_in @ mod.weight_ih.T + mod.bias_ih
    gh = h_obs @ mod.weight_hh.T + mod.bias_hh
    r = jax.nn.sigmoid(gi[:, :H] + gh[:, :H])
    z = jax.nn.sigmoid(gi[:, H:2 * H] + gh[:, H:2 * H])
    n = jnp.tanh(gi[:, 2 * H:] + r * gh[:, 2 * H:])
    h_new = (1.0 - z) * n + z * h_obs
    return h.at[i_obs].set(h_new), losses


if __name__ == "__main__":
    key = jax.random.PRNGKey(0)
    k_mod, k_h, k_p, k_x, k_m = jax.random.split(key, 5)

    D, H, P = 4, 32, 4          # input_size, hidden_size, prep_hidden
    N, n_obs = 20, 12           # total samples, observed samples (-> 2 grid steps)

    mod = GRUObservationCellLogvarPallas(D, H, P, k_mod)

    h = jax.random.normal(k_h, (N, H), jnp.float32)
    p = jax.random.normal(k_p, (N, 2 * D), jnp.float32)
    X_obs = jax.random.normal(k_x, (n_obs, D), jnp.float32)
    M_obs = (jax.random.uniform(k_m, (n_obs, D)) > 0.3).astype(jnp.float32)
    i_obs = jnp.array([0, 2, 3, 5, 7, 9, 11, 12, 14, 15, 17, 19], dtype=jnp.int32)

    h_out, losses = mod(h, p, X_obs, M_obs, i_obs)
    jax.block_until_ready((h_out, losses))

    h_ref, losses_ref = reference_forward(mod, h, p, X_obs, M_obs, i_obs)
    np.testing.assert_allclose(np.asarray(h_out), np.asarray(h_ref), rtol=1e-4, atol=1e-5)
    np.testing.assert_allclose(np.asarray(losses), np.asarray(losses_ref), rtol=1e-4, atol=1e-5)

    print("KERNEL_OK")
</pallas_src>

<mosaic_0001>
module attributes {stable_mosaic.version = 11 : i64} {
  func.func @_gru_obs_kernel(%arg0: i32, %arg1: memref<12xi32, #tpu.memory_space<smem>>, %arg2: memref<8x4xf32, #tpu.memory_space<vmem>>, %arg3: memref<8x4xf32, #tpu.memory_space<vmem>>, %arg4: memref<20x8xf32, #tpu.memory_space<any>>, %arg5: memref<20x32xf32, #tpu.memory_space<any>>, %arg6: memref<20x16xf32, #tpu.memory_space<vmem>>, %arg7: memref<16x128xf32, #tpu.memory_space<vmem>>, %arg8: memref<32x128xf32, #tpu.memory_space<vmem>>, %arg9: memref<1x128xf32, #tpu.memory_space<vmem>>, %arg10: memref<20x32xf32, #tpu.memory_space<any>>, %arg11: memref<8x4xf32, #tpu.memory_space<vmem>>, %arg12: memref<8x8xf32, #tpu.memory_space<vmem>>, %arg13: memref<8x32xf32, #tpu.memory_space<vmem>>, %arg14: memref<8x32xf32, #tpu.memory_space<vmem>>, %arg15: memref<3x!tpu.dma_semaphore, #tpu.memory_space<semaphore_mem>>) attributes {dimension_semantics = [#tpu.dimension_semantics<parallel>], iteration_bounds = array<i64: 2>, scalar_prefetch = 1 : i64, scratch_operands = 4 : i64, tpu.core_type = #tpu.core_type<tc>, window_params = [{transform_indices = @transform_0, window_bounds = array<i64: 8, 4>}, {transform_indices = @transform_1, window_bounds = array<i64: 8, 4>}, {}, {}, {pipeline_mode = #tpu.pipeline_mode<synchronous>, transform_indices = @transform_4, window_bounds = array<i64: 20, 16>}, {pipeline_mode = #tpu.pipeline_mode<synchronous>, transform_indices = @transform_5, window_bounds = array<i64: 16, 128>}, {pipeline_mode = #tpu.pipeline_mode<synchronous>, transform_indices = @transform_6, window_bounds = array<i64: 32, 128>}, {pipeline_mode = #tpu.pipeline_mode<synchronous>, transform_indices = @transform_7, window_bounds = array<i64: 1, 128>}, {}, {transform_indices = @transform_9, window_bounds = array<i64: 8, 4>}]} {
    %c8_i32 = arith.constant 8 : i32
    %0 = arith.muli %arg0, %c8_i32 : i32
    %c12_i32 = arith.constant 12 : i32
    %1 = arith.subi %c12_i32, %0 : i32
    %c8_i32_0 = arith.constant 8 : i32
    %2 = arith.minsi %c8_i32_0, %1 : i32
    %c0_i32 = arith.constant 0 : i32
    %c0_i32_1 = arith.constant 0 : i32
    %3 = arith.subi %2, %c0_i32_1 : i32
    %4 = arith.addi %c0_i32_1, %3 : i32
    %c1_i32 = arith.constant 1 : i32
    scf.for %arg16 = %c0_i32_1 to %4 step %c1_i32  : i32 {
      %74 = arith.addi %0, %arg16 : i32
      %75 = arith.index_cast %74 : i32 to index
      %76 = memref.load %arg1[%75] : memref<12xi32, #tpu.memory_space<smem>>
      %c0_i32_42 = arith.constant 0 : i32
      %c0_i32_43 = arith.constant 0 : i32
      %77 = tpu.memref_slice %arg4[%76, %c0_i32_43] : memref<20x8xf32, #tpu.memory_space<any>> -> memref<1x8xf32, #tpu.memory_space<any>>
      %c0_i32_44 = arith.constant 0 : i32
      %78 = tpu.memref_slice %arg12[%arg16, %c0_i32_44] : memref<8x8xf32, #tpu.memory_space<vmem>> -> memref<1x8xf32, #tpu.memory_space<vmem>>
      %79 = tpu.memref_slice %arg15[%c0_i32_42] : memref<3x!tpu.dma_semaphore, #tpu.memory_space<semaphore_mem>> -> memref<1x!tpu.dma_semaphore, #tpu.memory_space<semaphore_mem>>
      %80 = tpu.memref_squeeze %79 : memref<1x!tpu.dma_semaphore, #tpu.memory_space<semaphore_mem>> -> memref<!tpu.dma_semaphore, #tpu.memory_space<semaphore_mem>>
      tpu.enqueue_dma source(%77 : memref<1x8xf32, #tpu.memory_space<any>>) target(%78 : memref<1x8xf32, #tpu.memory_space<vmem>>) target_semaphore(%80 : memref<!tpu.dma_semaphore, #tpu.memory_space<semaphore_mem>>)
      %c1_i32_45 = arith.constant 1 : i32
      %c0_i32_46 = arith.constant 0 : i32
      %81 = tpu.memref_slice %arg5[%76, %c0_i32_46] : memref<20x32xf32, #tpu.memory_space<any>> -> memref<1x32xf32, #tpu.memory_space<any>>
      %c0_i32_47 = arith.constant 0 : i32
      %82 = tpu.memref_slice %arg13[%arg16, %c0_i32_47] : memref<8x32xf32, #tpu.memory_space<vmem>> -> memref<1x32xf32, #tpu.memory_space<vmem>>
      %83 = tpu.memref_slice %arg15[%c1_i32_45] : memref<3x!tpu.dma_semaphore, #tpu.memory_space<semaphore_mem>> -> memref<1x!tpu.dma_semaphore, #tpu.memory_space<semaphore_mem>>
      %84 = tpu.memref_squeeze %83 : memref<1x!tpu.dma_semaphore, #tpu.memory_space<semaphore_mem>> -> memref<!tpu.dma_semaphore, #tpu.memory_space<semaphore_mem>>
      tpu.enqueue_dma source(%81 : memref<1x32xf32, #tpu.memory_space<any>>) target(%82 : memref<1x32xf32, #tpu.memory_space<vmem>>) target_semaphore(%84 : memref<!tpu.dma_semaphore, #tpu.memory_space<semaphore_mem>>)
    }
    %c0_i32_2 = arith.constant 0 : i32
    %c0_i32_3 = arith.constant 0 : i32
    %5 = arith.subi %2, %c0_i32_3 : i32
    %6 = arith.addi %c0_i32_3, %5 : i32
    %c1_i32_4 = arith.constant 1 : i32
    scf.for %arg16 = %c0_i32_3 to %6 step %c1_i32_4  : i32 {
      %c0_i32_42 = arith.constant 0 : i32
      %c0_i32_43 = arith.constant 0 : i32
      %c0_i32_44 = arith.constant 0 : i32
      %74 = tpu.memref_slice %arg4[%c0_i32_43, %c0_i32_44] : memref<20x8xf32, #tpu.memory_space<any>> -> memref<1x8xf32, #tpu.memory_space<any>>
      %c0_i32_45 = arith.constant 0 : i32
      %c0_i32_46 = arith.constant 0 : i32
      %75 = tpu.memref_slice %arg12[%c0_i32_45, %c0_i32_46] : memref<8x8xf32, #tpu.memory_space<vmem>> -> memref<1x8xf32, #tpu.memory_space<vmem>>
      %76 = tpu.memref_slice %arg15[%c0_i32_42] : memref<3x!tpu.dma_semaphore, #tpu.memory_space<semaphore_mem>> -> memref<1x!tpu.dma_semaphore, #tpu.memory_space<semaphore_mem>>
      %77 = tpu.memref_squeeze %76 : memref<1x!tpu.dma_semaphore, #tpu.memory_space<semaphore_mem>> -> memref<!tpu.dma_semaphore, #tpu.memory_space<semaphore_mem>>
      tpu.wait_dma2 semaphore(%77 : memref<!tpu.dma_semaphore, #tpu.memory_space<semaphore_mem>>) src(%74 : memref<1x8xf32, #tpu.memory_space<any>>) dst(%75 : memref<1x8xf32, #tpu.memory_space<vmem>>)
      %c1_i32_47 = arith.constant 1 : i32
      %c0_i32_48 = arith.constant 0 : i32
      %c0_i32_49 = arith.constant 0 : i32
      %78 = tpu.memref_slice %arg5[%c0_i32_48, %c0_i32_49] : memref<20x32xf32, #tpu.memory_space<any>> -> memref<1x32xf32, #tpu.memory_space<any>>
      %c0_i32_50 = arith.constant 0 : i32
      %c0_i32_51 = arith.constant 0 : i32
      %79 = tpu.memref_slice %arg13[%c0_i32_50, %c0_i32_51] : memref<8x32xf32, #tpu.memory_space<vmem>> -> memref<1x32xf32, #tpu.memory_space<vmem>>
      %80 = tpu.memref_slice %arg15[%c1_i32_47] : memref<3x!tpu.dma_semaphore, #tpu.memory_space<semaphore_mem>> -> memref<1x!tpu.dma_semaphore, #tpu.memory_space<semaphore_mem>>
      %81 = tpu.memref_squeeze %80 : memref<1x!tpu.dma_semaphore, #tpu.memory_space<semaphore_mem>> -> memref<!tpu.dma_semaphore, #tpu.memory_space<semaphore_mem>>
      tpu.wait_dma2 semaphore(%81 : memref<!tpu.dma_semaphore, #tpu.memory_space<semaphore_mem>>) src(%78 : memref<1x32xf32, #tpu.memory_space<any>>) dst(%79 : memref<1x32xf32, #tpu.memory_space<vmem>>)
    }
    %c0 = arith.constant 0 : index
    %c0_5 = arith.constant 0 : index
    %7 = vector.load %arg2[%c0, %c0_5] : memref<8x4xf32, #tpu.memory_space<vmem>>, vector<8x4xf32>
    %c0_6 = arith.constant 0 : index
    %c0_7 = arith.constant 0 : index
    %8 = vector.load %arg3[%c0_6, %c0_7] : memref<8x4xf32, #tpu.memory_space<vmem>>, vector<8x4xf32>
    %c0_8 = arith.constant 0 : index
    %c0_9 = arith.constant 0 : index
    %9 = vector.load %arg12[%c0_8, %c0_9] : memref<8x8xf32, #tpu.memory_space<vmem>>, vector<8x8xf32>
    %c0_10 = arith.constant 0 : index
    %c0_11 = arith.constant 0 : index
    %10 = vector.load %arg13[%c0_10, %c0_11] : memref<8x32xf32, #tpu.memory_space<vmem>>, vector<8x32xf32>
    %11 = vector.extract_strided_slice %9 {offsets = [0, 0], sizes = [8, 4], strides = [1, 1]} : vector<8x8xf32> to vector<8x4xf32>
    %12 = vector.extract_strided_slice %9 {offsets = [0, 4], sizes = [8, 4], strides = [1, 1]} : vector<8x8xf32> to vector<8x4xf32>
    %cst = arith.constant -1.000000e+01 : f32
    %cst_12 = arith.constant 1.000000e+01 : f32
    %13 = vector.broadcast %cst : f32 to vector<8x4xf32>
    %14 = arith.maximumf %13, %12 : vector<8x4xf32>
    %15 = vector.broadcast %cst_12 : f32 to vector<8x4xf32>
    %16 = arith.minimumf %15, %14 : vector<8x4xf32>
    %cst_13 = arith.constant -5.000000e-01 : f32
    %17 = vector.broadcast %cst_13 : f32 to vector<8x4xf32>
    %18 = arith.mulf %17, %16 : vector<8x4xf32>
    %19 = math.exp %18 : vector<8x4xf32>
    %20 = arith.subf %7, %11 : vector<8x4xf32>
    %21 = arith.mulf %20, %19 : vector<8x4xf32>
    %cst_14 = arith.constant -1.000000e+06 : f32
    %cst_15 = arith.constant 1.000000e+06 : f32
    %22 = vector.broadcast %cst_14 : f32 to vector<8x4xf32>
    %23 = arith.maximumf %22, %21 : vector<8x4xf32>
    %24 = vector.broadcast %cst_15 : f32 to vector<8x4xf32>
    %25 = arith.minimumf %24, %23 : vector<8x4xf32>
    %26 = arith.mulf %25, %25 : vector<8x4xf32>
    %27 = arith.addf %26, %16 : vector<8x4xf32>
    %cst_16 = arith.constant 1.83787704 : f32
    %28 = vector.broadcast %cst_16 : f32 to vector<8x4xf32>
    %29 = arith.addf %27, %28 : vector<8x4xf32>
    %30 = arith.mulf %29, %8 : vector<8x4xf32>
    %cst_17 = arith.constant 5.000000e-01 : f32
    %31 = vector.broadcast %cst_17 : f32 to vector<8x4xf32>
    %32 = arith.mulf %31, %30 : vector<8x4xf32>
    %c0_18 = arith.constant 0 : index
    %c0_19 = arith.constant 0 : index
    %33 = vector.load %arg11[%c0_18, %c0_19] : memref<8x4xf32, #tpu.memory_space<vmem>>, vector<8x4xf32>
    tpu.vector_store %arg11[%c0_18, %c0_19], %32 {strides = array<i32>} : memref<8x4xf32, #tpu.memory_space<vmem>>, vector<8x4xf32>,
    %34 = arith.mulf %7, %8 : vector<8x4xf32>
    %35 = arith.mulf %11, %8 : vector<8x4xf32>
    %36 = arith.mulf %16, %8 : vector<8x4xf32>
    %37 = arith.mulf %25, %8 : vector<8x4xf32>
    %38 = tpu.concatenate %34, %35, %36, %37, %8 in 1 : vector<8x4xf32>, vector<8x4xf32>, vector<8x4xf32>, vector<8x4xf32>, vector<8x4xf32> -> vector<8x20xf32>
    %c0_20 = arith.constant 0 : index
    %c0_21 = arith.constant 0 : index
    %39 = vector.load %arg6[%c0_20, %c0_21] : memref<20x16xf32, #tpu.memory_space<vmem>>, vector<20x16xf32>
    %cst_22 = arith.constant dense<0.000000e+00> : vector<8x16xf32>
    %40 = tpu.matmul %38, %39, %cst_22 {dimension_numbers = #tpu.dot_dimension_numbers<[1], [0], [0], [1], [0, 0, 1, 1], [], []>} : vector<8x20xf32>, vector<20x16xf32>, vector<8x16xf32> -> vector<8x16xf32>
    %cst_23 = arith.constant 0.000000e+00 : f32
    %41 = vector.broadcast %cst_23 : f32 to vector<8x16xf32>
    %42 = arith.maximumf %40, %41 : vector<8x16xf32>
    %c0_24 = arith.constant 0 : index
    %c0_25 = arith.constant 0 : index
    %43 = vector.load %arg7[%c0_24, %c0_25] : memref<16x128xf32, #tpu.memory_space<vmem>>, vector<16x128xf32>
    %cst_26 = arith.constant dense<0.000000e+00> : vector<8x128xf32>
    %44 = tpu.matmul %42, %43, %cst_26 {dimension_numbers = #tpu.dot_dimension_numbers<[1], [0], [0], [1], [0, 0, 1, 1], [], []>} : vector<8x16xf32>, vector<16x128xf32>, vector<8x128xf32> -> vector<8x128xf32>
    %c0_27 = arith.constant 0 : index
    %c0_28 = arith.constant 0 : index
    %45 = vector.load %arg8[%c0_27, %c0_28] : memref<32x128xf32, #tpu.memory_space<vmem>>, vector<32x128xf32>
    %cst_29 = arith.constant dense<0.000000e+00> : vector<8x128xf32>
    %46 = tpu.matmul %10, %45, %cst_29 {dimension_numbers = #tpu.dot_dimension_numbers<[1], [0], [0], [1], [0, 0, 1, 1], [], []>} : vector<8x32xf32>, vector<32x128xf32>, vector<8x128xf32> -> vector<8x128xf32>
    %47 = arith.addf %44, %46 : vector<8x128xf32>
    %c0_30 = arith.constant 0 : index
    %c0_31 = arith.constant 0 : index
    %48 = vector.load %arg9[%c0_30, %c0_31] : memref<1x128xf32, #tpu.memory_space<vmem>>, vector<1x128xf32>
    %49 = vector.broadcast %48 : vector<1x128xf32> to vector<8x128xf32>
    %50 = arith.addf %47, %49 : vector<8x128xf32>
    %51 = vector.extract_strided_slice %50 {offsets = [0, 0], sizes = [8, 64], strides = [1, 1]} : vector<8x128xf32> to vector<8x64xf32>
    %52 = arith.negf %51 : vector<8x64xf32>
    %53 = math.exp %52 : vector<8x64xf32>
    %cst_32 = arith.constant 1.000000e+00 : f32
    %54 = vector.broadcast %cst_32 : f32 to vector<8x64xf32>
    %55 = arith.addf %54, %53 : vector<8x64xf32>
    %56 = arith.divf %54, %55 : vector<8x64xf32>
    %57 = vector.extract_strided_slice %56 {offsets = [0, 0], sizes = [8, 32], strides = [1, 1]} : vector<8x64xf32> to vector<8x32xf32>
    %58 = vector.extract_strided_slice %56 {offsets = [0, 32], sizes = [8, 32], strides = [1, 1]} : vector<8x64xf32> to vector<8x32xf32>
    %59 = vector.extract_strided_slice %50 {offsets = [0, 64], sizes = [8, 32], strides = [1, 1]} : vector<8x128xf32> to vector<8x32xf32>
    %60 = vector.extract_strided_slice %50 {offsets = [0, 96], sizes = [8, 32], strides = [1, 1]} : vector<8x128xf32> to vector<8x32xf32>
    %61 = arith.mulf %57, %60 : vector<8x32xf32>
    %62 = arith.addf %59, %61 : vector<8x32xf32>
    %63 = math.tanh %62 : vector<8x32xf32>
    %cst_33 = arith.constant 1.000000e+00 : f32
    %64 = vector.broadcast %cst_33 : f32 to vector<8x32xf32>
    %65 = arith.subf %64, %58 : vector<8x32xf32>
    %66 = arith.mulf %65, %63 : vector<8x32xf32>
    %67 = arith.mulf %58, %10 : vector<8x32xf32>
    %68 = arith.addf %66, %67 : vector<8x32xf32>
    %c0_34 = arith.constant 0 : index
    %c0_35 = arith.constant 0 : index
    %69 = vector.load %arg14[%c0_34, %c0_35] : memref<8x32xf32, #tpu.memory_space<vmem>>, vector<8x32xf32>
    tpu.vector_store %arg14[%c0_34, %c0_35], %68 {strides = array<i32>} : memref<8x32xf32, #tpu.memory_space<vmem>>, vector<8x32xf32>,
    %c0_i32_36 = arith.constant 0 : i32
    %c0_i32_37 = arith.constant 0 : i32
    %70 = arith.subi %2, %c0_i32_37 : i32
    %71 = arith.addi %c0_i32_37, %70 : i32
    %c1_i32_38 = arith.constant 1 : i32
    scf.for %arg16 = %c0_i32_37 to %71 step %c1_i32_38  : i32 {
      %74 = arith.addi %0, %arg16 : i32
      %75 = arith.index_cast %74 : i32 to index
      %76 = memref.load %arg1[%75] : memref<12xi32, #tpu.memory_space<smem>>
      %c2_i32 = arith.constant 2 : i32
      %c0_i32_42 = arith.constant 0 : i32
      %77 = tpu.memref_slice %arg14[%arg16, %c0_i32_42] : memref<8x32xf32, #tpu.memory_space<vmem>> -> memref<1x32xf32, #tpu.memory_space<vmem>>
      %c0_i32_43 = arith.constant 0 : i32
      %78 = tpu.memref_slice %arg10[%76, %c0_i32_43] : memref<20x32xf32, #tpu.memory_space<any>> -> memref<1x32xf32, #tpu.memory_space<any>>
      %79 = tpu.memref_slice %arg15[%c2_i32] : memref<3x!tpu.dma_semaphore, #tpu.memory_space<semaphore_mem>> -> memref<1x!tpu.dma_semaphore, #tpu.memory_space<semaphore_mem>>
      %80 = tpu.memref_squeeze %79 : memref<1x!tpu.dma_semaphore, #tpu.memory_space<semaphore_mem>> -> memref<!tpu.dma_semaphore, #tpu.memory_space<semaphore_mem>>
      tpu.enqueue_dma source(%77 : memref<1x32xf32, #tpu.memory_space<vmem>>) target(%78 : memref<1x32xf32, #tpu.memory_space<any>>) target_semaphore(%80 : memref<!tpu.dma_semaphore, #tpu.memory_space<semaphore_mem>>)
    }
    %c0_i32_39 = arith.constant 0 : i32
    %c0_i32_40 = arith.constant 0 : i32
    %72 = arith.subi %2, %c0_i32_40 : i32
    %73 = arith.addi %c0_i32_40, %72 : i32
    %c1_i32_41 = arith.constant 1 : i32
    scf.for %arg16 = %c0_i32_40 to %73 step %c1_i32_41  : i32 {
      %c2_i32 = arith.constant 2 : i32
      %c0_i32_42 = arith.constant 0 : i32
      %c0_i32_43 = arith.constant 0 : i32
      %74 = tpu.memref_slice %arg14[%c0_i32_42, %c0_i32_43] : memref<8x32xf32, #tpu.memory_space<vmem>> -> memref<1x32xf32, #tpu.memory_space<vmem>>
      %c0_i32_44 = arith.constant 0 : i32
      %c0_i32_45 = arith.constant 0 : i32
      %75 = tpu.memref_slice %arg10[%c0_i32_44, %c0_i32_45] : memref<20x32xf32, #tpu.memory_space<any>> -> memref<1x32xf32, #tpu.memory_space<any>>
      %76 = tpu.memref_slice %arg15[%c2_i32] : memref<3x!tpu.dma_semaphore, #tpu.memory_space<semaphore_mem>> -> memref<1x!tpu.dma_semaphore, #tpu.memory_space<semaphore_mem>>
      %77 = tpu.memref_squeeze %76 : memref<1x!tpu.dma_semaphore, #tpu.memory_space<semaphore_mem>> -> memref<!tpu.dma_semaphore, #tpu.memory_space<semaphore_mem>>
      tpu.wait_dma2 semaphore(%77 : memref<!tpu.dma_semaphore, #tpu.memory_space<semaphore_mem>>) src(%74 : memref<1x32xf32, #tpu.memory_space<vmem>>) dst(%75 : memref<1x32xf32, #tpu.memory_space<any>>)
    }
    return
  }
  func.func @transform_0(%arg0: i32, %arg1: memref<12xi32, #tpu.memory_space<smem>>) -> (i32, i32) {
    %c0_i32 = arith.constant 0 : i32
    %c0_i32_0 = arith.constant 0 : i32
    return %arg0, %c0_i32 : i32, i32
  }
  func.func @transform_1(%arg0: i32, %arg1: memref<12xi32, #tpu.memory_space<smem>>) -> (i32, i32) {
    %c0_i32 = arith.constant 0 : i32
    %c0_i32_0 = arith.constant 0 : i32
    return %arg0, %c0_i32 : i32, i32
  }
  func.func @transform_4(%arg0: i32, %arg1: memref<12xi32, #tpu.memory_space<smem>>) -> (i32, i32) {
    %c0_i32 = arith.constant 0 : i32
    %c0_i32_0 = arith.constant 0 : i32
    %c0_i32_1 = arith.constant 0 : i32
    return %c0_i32, %c0_i32_0 : i32, i32
  }
  func.func @transform_5(%arg0: i32, %arg1: memref<12xi32, #tpu.memory_space<smem>>) -> (i32, i32) {
    %c0_i32 = arith.constant 0 : i32
    %c0_i32_0 = arith.constant 0 : i32
    %c0_i32_1 = arith.constant 0 : i32
    return %c0_i32, %c0_i32_0 : i32, i32
  }
  func.func @transform_6(%arg0: i32, %arg1: memref<12xi32, #tpu.memory_space<smem>>) -> (i32, i32) {
    %c0_i32 = arith.constant 0 : i32
    %c0_i32_0 = arith.constant 0 : i32
    %c0_i32_1 = arith.constant 0 : i32
    return %c0_i32, %c0_i32_0 : i32, i32
  }
  func.func @transform_7(%arg0: i32, %arg1: memref<12xi32, #tpu.memory_space<smem>>) -> (i32, i32) {
    %c0_i32 = arith.constant 0 : i32
    %c0_i32_0 = arith.constant 0 : i32
    %c0_i32_1 = arith.constant 0 : i32
    return %c0_i32, %c0_i32_0 : i32, i32
  }
  func.func @transform_9(%arg0: i32, %arg1: memref<12xi32, #tpu.memory_space<smem>>) -> (i32, i32) {
    %c0_i32 = arith.constant 0 : i32
    %c0_i32_0 = arith.constant 0 : i32
    return %arg0, %c0_i32 : i32, i32
  }
}

</mosaic_0001>

<bundles_post_ra>
// kernel: tpu_custom_call.1
= control target key start
LH: loop header
LB: loop body
LE: loop exit
PB: predicated region body
PF: predicated region fallthrough
CT: control target
= control target key end

     0   :  { %s1336_s0 = inlined_call_operand.vmem [shape: s32[12], index: 0, kind: input, shape index: {}]   ;;  %s1337_s1 = inlined_call_operand.vmem [shape: f32[16,4], index: 1, kind: input, shape index: {}]   ;;  %s1338_s2 = inlined_call_operand.vmem [shape: f32[16,4], index: 2, kind: input, shape index: {}]   ;;  %s1339_s3 = inlined_call_operand.vmem [shape: f32[20,8], index: 3, kind: input, shape index: {}]   ;;  %s1340_s4 = inlined_call_operand.vmem [shape: f32[20,32], index: 4, kind: input, shape index: {}, may-alias: {4,9}]   ;;  %s1341_s5 = inlined_call_operand.vmem [shape: f32[20,16], index: 5, kind: input, shape index: {}]   ;;  %s1342_s6 = inlined_call_operand.vmem [shape: f32[16,128], index: 6, kind: input, shape index: {}]   ;;  %s1343_s7 = inlined_call_operand.vmem [shape: f32[32,128], index: 7, kind: input, shape index: {}]   ;;  %s1344_s8 = inlined_call_operand.vmem [shape: f32[1,128], index: 8, kind: input, shape index: {}]   ;;  %s1345_s9 = inlined_call_operand.vmem [shape: f32[20,32], index: 9, kind: output, shape index: {0}, may-alias: {4,9}]   ;;  %s1346_s10 = inlined_call_operand.vmem [shape: f32[16,4], index: 10, kind: output, shape index: {1}]  }
   0x1   :  { %s16_s15 = sshll.u32 %s1336_s0, 4  ;;  %s17_s15 = int_to_ptr.vmem [resolvable:$true] %s16_s15 }
   0x2   :  { %s1073_s16 = scalar_lea.vmem %s17_s15, 16  ;;  %p1078_p1 = scmp.lt.s32.totalorder %s17_s15, %s17_s15 }
   0x3   :  { %p1074_p0 = scmp.ne.s32.totalorder %s17_s15, %s1073_s16  ;;  %p1079_p2 = scmp.lt.s32.totalorder %s1073_s16, %s1073_s16 }
   0x5   :  { %p1080_p3 = por %p1079_p2, %p1078_p1 }
   0x7   :  { %p1081_p4 = pnand %p1080_p3, %p1074_p0 }
   0x9   :  { %1084 = shalt.err (!%p1081_p4)  }
   0xa   :  { %s1133_s17 = smov [#allocation7]  }
   0xb   :  { %19 = dma.vmem_to_smem %s17_s15, 16, %s1133_s17, [#allocation6] }
   0xc   :  { %1105 = dma.done.wait [#allocation6], 16 }
   0xd   :  { %1106 = vsyncadd [#allocation6], 4294967280 }
   0xe   :  { %21 = sfence }
   0xf   :  { %s1201_s18 = smov 0  }
  0x10 LB: > { %s938_s0 = sadd.s32 4294967295, %s1115_s18   ;;  %p942_p5 = scmp.ge.s32.totalorder %s1115_s18, 1  ;;  %s1115_s18 = sphi %s1201_s18, %s27_s18  }
  0x11   : > { %p231_p6 = scmp.lt.s32.totalorder %s1115_s18, 3 }
  0x13   : > { %p232_p7 = pnand %p942_p5, %p231_p6 }
  0x14   : > { %p263_p8 = scmp.lt.s32.totalorder (!%p232_p7), %s938_s0, 1  ;;  %s1209_s19 = sshll.u32 (!%p232_p7), %s938_s0, 3 }
  0x15   : > { %235 = sbr.rel (%p232_p7) target bundleno = 1237 (0x4d5), region = 44  ;;  %s1212_s20 = ssub.s32 (!%p232_p7), 12, %s1209_s19 }
  0x16   : > { %p277_p9 = scmp.lt.s32.totalorder (!%p232_p7), %s1212_s20, 8  ;;  %p964_p10 = scmp.le.s32.totalorder (!%p232_p7), %s1212_s20, 0 }
  0x1a   : > { %s1348_s0 = smov (!%p263_p8, %s938_s0), 1  ;;  %894 = sbr.rel (%p964_p10) target bundleno = 52 (0x34), region = 231 }
  0x1b   : > { %s1215_s21 = sshll.u32 %s1348_s0, 3  ;;  %s1117_s12 = smov (!%p964_p10), 0  }
  0x1c   : > { %s266_s24 = scalar_lea.vmem %s1337_s1, %s1215_s21  ;;  %s270_s27 = scalar_lea.vmem %s1338_s2, %s1215_s21 }
  0x1d   : > { %s274_s30 = scalar_lea.vmem %s1346_s10, %s1215_s21 }
  0x1e   : > { %s1230_s11 = scalar_select %p277_p9, %s1212_s20, 8 }
  0x1f LB: >> { %s285_s13 = sadd.s32 %s1119_s12, %s1209_s19  ;;  %s288_s0 = scalar_lea.vmem [#allocation2], %s1119_s12  ;;  %s1119_s12 = sphi %s1117_s12, %s282_s12  }
  0x20   : >> { %s286_s14 = sld [smem:[#allocation7 + %s285_s13]] }
  0x26   : >> { %s287_s17 = scalar_lea.vmem %s1339_s3, %s286_s14 }
  0x27   : >> { %v307_v0 = vld [vmem:[%s287_s17] sm:$0x1] }
  0x28   : >> { %308 = vst [vmem:[%s288_s0] sm:$0x1] %v307_v0 }
  0x29   : >> { %334 = vsyncadd [#allocation5], 16  ;;  %s335_s25 = scalar_lea.vmem %s1340_s4, %s286_s14  ;;  %s336_s26 = scalar_lea.vmem [#allocation3], %s1119_s12 }
  0x2a   : >> { %v356_v1 = vld [vmem:[%s335_s25] sm:$0x1] }
  0x2b   : >> { %357 = vst [vmem:[%s336_s26] sm:$0x1] %v356_v1 }
  0x2c   : >> { %383 = vsyncadd [#allocation5 + $0x1], 16  ;;  %s282_s12 = sadd.s32 1, %s1119_s12  }
  0x2d   : >> { %p281_p11 = scmp.ge.s32.totalorder %s282_s12, %s1230_s11 }
  0x2f   : > { %284 = sbr.rel (!%p281_p11) target bundleno = 31 (0x1f), region = 237 }
  0x34 PF: > { %899 = sbr.rel (%p964_p10) target bundleno = 68 (0x44), region = 242  ;;  %s1121_s28 = smov (!%p964_p10), 0  }
  0x39 LB: >> { %1107 = dma.done.wait [#allocation5], 16  ;;  %s1123_s28 = sphi %s1121_s28, %s387_s28  }
  0x3a   : >> { %1108 = vsyncadd [#allocation5], 4294967280 }
  0x3b   : >> { %1109 = dma.done.wait [#allocation5 + $0x1], 16 }
  0x3c   : >> { %1110 = vsyncadd [#allocation5 + $0x1], 4294967280  ;;  %s387_s28 = sadd.s32 1, %s1123_s28  }
  0x3d   : >> { %p386_p12 = scmp.ge.s32.totalorder %s387_s28, %s1230_s11 }
  0x3f   : > { %389 = sbr.rel (!%p386_p12) target bundleno = 57 (0x39), region = 248 }
  0x44 PF: > { %s1134_s13 = smov 4   ;;  %v1135_v8 = vmov 0.0   ;;  %s1136_s14 = smov 124   ;;  %vm461_vm0 = vcmask 1043456   ;;  %vm1137_vm1 = vmmov 0   ;;  %vm422_vm2 = vcmask 31744  }
  0x45   : > { %v398_v2 = vld [vmem:[#allocation2] sm:$0xff]  ;;  %988 = vmatprep.subr.mxu0 %v1135_v8  ;;  %997 = vmatprep.subr.mxu1 %v1135_v8  ;;  %v456_v10 = vld [vmem:[%s1341_s5 + $0x10] sm:$0xf]  ;;  %v455_v12 = vld [vmem:[%s1341_s5 + $0x8] sm:$0xff]  ;;  %s1138_s16 = smov 12   ;;  %vm448_vm3 = vcmask 64512  }
  0x46   : > { %v1246_v3 = vclamps-f32 %v398_v2, 10.0  ;;  %v1254_v6 = vld [vmem:[%s270_s27] sm:$0xff]  ;;  %989 = vmatpush3.msk.msra.mxu0 %vm461_vm0, %v456_v10  ;;  %994 = vmatprep.mubr.msk.f32.mxu0 %vm1137_vm1, %v1135_v8  ;;  %v541_v15 = vld [vmem:[%s1343_s7 + $0x18] sm:$0xff]  ;;  %v540_v16 = vld [vmem:[%s1343_s7 + $0x10] sm:$0xff]  ;;  %s1139_s27 = smov 16   ;;  %vm450_vm4 = vcmask 97280  }
  0x47   : > { %v425_v7 = vmul.f32 %v398_v2, %v1254_v6  ;;  %v396_v11 = vld [vmem:[%s266_s24] sm:$0xff]  ;;  %990 = vmatprep.subr.mxu0 %v1135_v8  ;;  %1005 = vmatprep.mubr.msk.f32.mxu1 %vm1137_vm1, %v1135_v8  ;;  %v539_v19 = vld [vmem:[%s1343_s7 + $0x8] sm:$0xff]  ;;  %vm452_vm5 = vcmask 130048   ;;  %vm457_vm6 = vcmask 162816   ;;  %vm542_vm7 = vcmask 261120   ;;  %s1140_s24 = smov 32  }
  0x48   : > { %v402_v4 = vmul.f32 -0.5, %v1246_v3  ;;  %991 = vmatpush3.msra.mxu0 %v455_v12  ;;  %v405_v13 = vsub.f32 %v396_v11, %v398_v2  ;;  %v454_v14 = vld [vmem:[%s1341_s5] sm:$0xff]  ;;  %998 = vmatpush3.msra.mxu1 %v541_v15  ;;  %v424_v25 = vmul.f32 %v1254_v6, %v396_v11  ;;  %v537_v32 = vld [vmem:[%s1342_s6 + $0x8] sm:$0xff]  ;;  %s1141_s29 = smov 64   ;;  %s1142_s12 = smov 96  }
  0x49   : > { %433 = vrot.lane.b32.xlu1 %v425_v7, %s1134_s13  ;;  %992 = vmatprep.subr.mxu0 %v1135_v8  ;;  %v538_v34 = vld [vmem:[%s1343_s7] sm:$0xff]  ;;  %v399_v35 = vld [vmem:[#allocation3] sm:$0xff] }
  0x4a   : > { %v403_v5 = vmul.f32 1.442695, %v402_v4  ;;  %993 = vmatpush3.msra.mxu0 %v454_v14  ;;  %999 = vmatprep.subr.mxu1 %v1135_v8  ;;  %v536_v36 = vld [vmem:[%s1342_s6] sm:$0xff] }
  0x4b   : > { %1008 = vmatprep.subr.mxu0 %v1135_v8  ;;  %1000 = vmatpush3.msra.mxu1 %v540_v16  ;;  %v955_v43 = vld [vmem:[%s1344_s8] ss:$0 sm:$0xff] }
  0x4c   : > { %1065 = vpow2.f32 %v403_v5  ;;  %1001 = vmatprep.subr.mxu1 %v1135_v8 }
  0x4d   : > { %1002 = vmatpush3.msra.mxu1 %v539_v19 }
  0x4e   : > { %1003 = vmatprep.subr.mxu1 %v1135_v8 }
  0x4f   : > { %1004 = vmatpush3.msra.mxu1 %v538_v34 }
  0x50   : > { %1006 = vmatmul.mubr.msk.f32.vlgmr.msra.gmra.mxu1 %vm542_vm7, %v399_v35 }
  0x59   : > { %v1066_v9 = vpop.eup %1065 }
  0x5a   : > { %407 = vrot.lane.b32.xlu0 %v1066_v9, %s1136_s14 }
  0x5e   : > { %427 = vrot.lane.b32.xlu0 %v1254_v6, %s1134_s13 }
  0xbb   : > { %v434_v24 = vpop.permute.xlu1 %433 }
  0xbc   : > { %v447_v26 = vsel %vm422_vm2, %v424_v25, %v434_v24 }
  0xcc   : > { %v408_v17 = vpop.permute.xlu0 %407 }
  0xcd   : > { %v410_v18 = vmul.f32 %v408_v17, %v405_v13 }
  0xcf   : > { %v1286_v20 = vclamps-f32 %v410_v18, 1000000.0 }
  0xd0   : > { %v428_v21 = vpop.permute.xlu0 %427 }
  0xd1   : > { %v431_v22 = vmul.f32 %v1286_v20, %v1254_v6  ;;  %v430_v23 = vmul.f32 %v1246_v3, %v428_v21  ;;  %v413_v62 = vmul.f32 %v1286_v20, %v1286_v20 }
  0xd3   : > { %437 = vrot.lane.b32.xlu1 %v430_v23, %s1134_s13  ;;  %441 = vrot.lane.b32.xlu0 %v431_v22, %s1138_s16 }
  0xd7   : > { %444 = vrot.lane.b32.xlu1 %v1254_v6, %s1139_s27 }
 0x110   : > { %v612_v40 = vpop.f32.mrf.mxu1 }
 0x112   : > { %v1007_v41 = vpop.f32.mrf.mxu1 }
 0x145   : > { %v438_v27 = vpop.permute.xlu1 %437  ;;  %v442_v29 = vpop.permute.xlu0 %441 }
 0x146   : > { %v449_v28 = vsel %vm448_vm3, %v447_v26, %v438_v27 }
 0x147   : > { %v451_v30 = vsel %vm450_vm4, %v449_v28, %v442_v29 }
 0x149   : > { %v445_v31 = vpop.permute.xlu1 %444 }
 0x14a   : > { %v453_v33 = vsel %vm452_vm5, %v451_v30, %v445_v31 }
 0x14b   : > { %995 = vmatmul.mubr.msk.f32.vlgmr.msra.gmra.mxu0 %vm457_vm6, %v453_v33 }
 0x14c   : > { %1009 = vmatpush3.msra.mxu0 %v537_v32  ;;  %1012 = vmatprep.mubr.msk.f32.mxu0 %vm1137_vm1, %v1135_v8 }
 0x14d   : > { %1010 = vmatprep.subr.mxu0 %v1135_v8 }
 0x14e   : > { %1011 = vmatpush3.msra.mxu0 %v536_v36 }
 0x20b   : > { %v531_v37 = vpop.f32.mrf.mxu0 }
 0x20c   : > { %v535_v38 = vmax.f32 %v531_v37, 0.0 }
 0x20d   : > { %v996_v39 = vpop.f32.mrf.mxu0 }
 0x20e   : > { %1013 = vmatmul.mubr.msk.f32.vlgmr.msra.gmra.mxu0 %vm452_vm5, %v535_v38 }
 0x2ce   : > { %v685_v42 = vpop.f32.mrf.mxu0 }
 0x2cf   : > { %v686_v44 = vadd.f32 %v685_v42, %v612_v40 }
 0x2d0   : > { %v1014_v45 = vpop.f32.mrf.mxu0 }
 0x2d1   : > { %v696_v46 = vadd.f32 %v955_v43, %v686_v44 }
 0x2d3   : > { %704 = vrot.lane.b32.xlu0 %v696_v46, %s1140_s24  ;;  %v956_v47 = vmul.f32 -1.442695, %v696_v46 }
 0x2d5   : > { %1067 = vpow2.f32 %v956_v47 }
 0x2e2   : > { %v1068_v48 = vpop.eup %1067 }
 0x2e3   : > { %v700_v49 = vadd.f32 1.0, %v1068_v48 }
 0x2e5   : > { %1069 = vrcp.f32 %v700_v49 }
 0x2f2   : > { %v1070_v50 = vpop.eup %1069 }
 0x2f3   : > { %v714_v57 = vsub.f32 1.0, %v1070_v50 }
 0x345   : > { %v705_v51 = vpop.permute.xlu0 %704 }
 0x346   : > { %v707_v52 = vmul.f32 %v1070_v50, %v705_v51 }
 0x348   : > { %709 = vrot.lane.b32.xlu1 %v707_v52, %s1141_s29 }
 0x34c   : > { %720 = vrot.lane.b32.xlu1 %v399_v35, %s1140_s24 }
 0x3ba   : > { %v710_v53 = vpop.permute.xlu1 %709 }
 0x3bb   : > { %v712_v54 = vadd.f32 %v710_v53, %v696_v46 }
 0x3bd   : > { %1071 = vtanh.f32 %v712_v54 }
 0x3be   : > { %v721_v56 = vpop.permute.xlu1 %720 }
 0x3bf   : > { %v723_v59 = vmul.f32 %v1070_v50, %v721_v56 }
 0x3ca   : > { %v1072_v55 = vpop.eup %1071 }
 0x3cb   : > { %716 = vrot.lane.b32.xlu0 %v1072_v55, %s1142_s12 }
 0x3cf   : > { %415 = vrot.lane.b32.xlu0 %v1246_v3, %s1136_s14  ;;  %s1125_s14 = smov (!%p964_p10), 0  }
 0x43d   : > { %v717_v58 = vpop.permute.xlu0 %716 }
 0x43e   : > { %v719_v60 = vmul.f32 %v717_v58, %v714_v57 }
 0x440   : > { %v724_v61 = vadd.f32 %v723_v59, %v719_v60 }
 0x441   : > { %v416_v63 = vpop.permute.xlu0 %415 }
 0x442   : > { %v418_v0 = vadd.f32 %v416_v63, %v413_v62  ;;  %726 = vrot.lane.b32.xlu1 %v724_v61, %s1142_s12 }
 0x444   : > { %v419_v1 = vadd.f32 1.837877, %v418_v0 }
 0x446   : > { %v420_v2 = vmul.f32 %v419_v1, %v1254_v6 }
 0x448   : > { %v421_v4 = vmul.f32 0.5, %v420_v2 }
 0x44a   : > { %423 = vst.msk [vmem:[%s274_s30] sm:$0xff] %vm422_vm2, %v421_v4 }
 0x4b1   : > { %904 = sbr.rel (%p964_p10) target bundleno = 1223 (0x4c7), region = 253 }
 0x4b4   : > { %v727_v3 = vpop.permute.xlu1 %726 }
 0x4b5   : > { %729 = vst.msk [vmem:[#allocation4] sm:$0xff] %vm542_vm7, %v727_v3 }
 0x4b6 LB: >> { %s736_s27 = sadd.s32 %s1127_s14, %s1209_s19  ;;  %s738_s17 = scalar_lea.vmem [#allocation4], %s1127_s14  ;;  %s1127_s14 = sphi %s1125_s14, %s733_s14  }
 0x4b7   : >> { %s737_s13 = sld [smem:[#allocation7 + %s736_s27]] }
 0x4bc   : >> { %v759_v5 = vld [vmem:[%s738_s17] sm:$0x1] }
 0x4bd   : >> { %s739_s21 = scalar_lea.vmem %s1345_s9, %s737_s13 }
 0x4be   : >> { %760 = vst [vmem:[%s739_s21] sm:$0x1] %v759_v5 }
 0x4bf   : >> { %786 = vsyncadd [#allocation5 + $0x2], 16  ;;  %s733_s14 = sadd.s32 1, %s1127_s14  }
 0x4c0   : >> { %p732_p13 = scmp.ge.s32.totalorder %s733_s14, %s1230_s11 }
 0x4c2   : > { %735 = sbr.rel (!%p732_p13) target bundleno = 1206 (0x4b6), region = 259 }
 0x4c7 PF: > { %909 = sbr.rel (%p964_p10) target bundleno = 1237 (0x4d5), region = 264  ;;  %s1129_s30 = smov (!%p964_p10), 0  }
 0x4cc LB: >> { %1111 = dma.done.wait [#allocation5 + $0x2], 16  ;;  %s1131_s30 = sphi %s1129_s30, %s790_s30  }
 0x4cd   : >> { %1112 = vsyncadd [#allocation5 + $0x2], 4294967280  ;;  %s790_s30 = sadd.s32 1, %s1131_s30  }
 0x4ce   : >> { %p789_p0 = scmp.ge.s32.totalorder %s790_s30, %s1230_s11 }
 0x4d0   : > { %792 = sbr.rel (!%p789_p0) target bundleno = 1228 (0x4cc), region = 270 }
 0x4d5 PF: > { %s27_s18 = sadd.s32 1, %s1115_s18  }
 0x4d6   : > { %p24_p1 = scmp.ge.s32.totalorder %s27_s18, 4  }
 0x4d8   :  { %26 = sbr.rel (!%p24_p1) target bundleno = 16 (0x10), region = 281 }
 0x4dd   :  { %816 = vsyncmov [#allocation5] }
 0x4e0   :  { %s817_s19 = vpop.sfrf %816 }
 0x4e1   :  { %p961_p2 = scmp.ne.s32.totalorder %s817_s19, 0 }
 0x4e3   :  { %821 = shalt.err (%p961_p2)  }
 0x4e4   :  { %823 = vsyncmov [#allocation5 + $0x1] }
 0x4e7   :  { %s824_s20 = vpop.sfrf %823 }
 0x4e8   :  { %p962_p3 = scmp.ne.s32.totalorder %s824_s20, 0 }
 0x4ea   :  { %828 = shalt.err (%p962_p3)  }
 0x4eb   :  { %830 = vsyncmov [#allocation5 + $0x2] }
 0x4ee   :  { %s831_s23 = vpop.sfrf %830 }
 0x4ef   :  { %p963_p4 = scmp.ne.s32.totalorder %s831_s23, 0 }
 0x4f1   :  { %835 = shalt.err (%p963_p4)  }

</bundles_post_ra>
